<compile_context>
chip_gen: v6e
topology: v6e:2x2x1
jax: 0.10.0
libtpu: 0.0.40
codegen_flags: <defaults>
</compile_context>

<pallas_src>
import jax
import jax.numpy as jnp
from jax import lax
from jax.experimental import pallas as pl
from jax.experimental.pallas import tpu as pltpu

IN_FEATURES = 20
OUT_FEATURES = 20
BATCH = 2

# Slab row offsets (all 8-sublane aligned so in-kernel static slices are cheap,
# aligned views).
_X_ROW = 0      # rows  0..7  : x           (2, 20) zero-padded to (8, 20)
_WT_ROW = 8     # rows  8..31 : W^T         (20, 20) zero-padded to (24, 20)
_B_ROW = 32     # rows 32..39 : b           (1, 20) zero-padded to (8, 20)
_RW_ROW = 40    # rows 40..63 : rand_weight (20, 20) zero-padded to (24, 20)
_SLAB_ROWS = 64


def fixed_hidden_mlp_kernel(slab_ref, out_ref):
    x = slab_ref[_X_ROW:_X_ROW + BATCH, :]               # (2, 20)
    wt = slab_ref[_WT_ROW:_WT_ROW + IN_FEATURES, :]      # (20, 20) == W^T
    b = slab_ref[_B_ROW:_B_ROW + 1, :]                   # (1, 20)
    rw = slab_ref[_RW_ROW:_RW_ROW + IN_FEATURES, :]      # (20, 20)

    # h = x @ W^T + b
    h = jnp.dot(x, wt, preferred_element_type=jnp.float32) + b
    # h = relu(h @ rand_weight + 1)
    h = jnp.maximum(jnp.dot(h, rw, preferred_element_type=jnp.float32) + 1.0, 0.0)
    # h = h @ W^T + b
    h = jnp.dot(h, wt, preferred_element_type=jnp.float32) + b

    # Both reductions happen exactly once (2 XLU reduces total).
    t = jnp.sum(h, keepdims=True)                         # (1, 1)  sum(h)
    a = jnp.sum(jnp.abs(h), keepdims=True)                # (1, 1)  |h|.sum() >= 0

    # while |h|.sum() > 1: h /= 2   ==>  closed-form halving count from a's
    # exponent field.  For a > 1, a <= 2^k first holds at
    #   k = unbiased_exp(a) + (mantissa != 0)
    # (an exact power of two needs exactly `exp` halvings; anything above it
    # needs one more).  Halving is exact in fp32 here (a stays >= 0.5, far
    # from subnormals), so this matches the reference loop count exactly.
    ai = pltpu.bitcast(a, jnp.int32)                      # (1, 1) raw bits
    biased_exp = jnp.bitwise_and(jnp.right_shift(ai, 23), jnp.int32(0xFF))
    mantissa = jnp.bitwise_and(ai, jnp.int32(0x7FFFFF))
    k = jnp.where(a > 1.0,
                  (biased_exp - 127) + (mantissa != 0).astype(jnp.int32),
                  jnp.int32(0))                           # (1, 1) int32, 0..~129

    # scale = 2^-k built as 2^-k1 * 2^-k2 with k1, k2 <= 65 so each factor is a
    # normal fp32 (a single exponent bitcast could not encode 2^-129 exactly).
    k1 = jnp.minimum(k, jnp.int32(64))
    k2 = k - k1
    s1 = pltpu.bitcast(jnp.left_shift(jnp.int32(127) - k1, 23), jnp.float32)
    s2 = pltpu.bitcast(jnp.left_shift(jnp.int32(127) - k2, 23), jnp.float32)

    # sum(h * 2^-k) == sum(h) * 2^-k exactly (power-of-two scaling commutes
    # with fp addition away from subnormals/overflow).
    # TODO(synk): on an inf/NaN abs-sum the torch while-loop would not
    # terminate; the kernel returns a finite/NaN value instead (edge case).
    result = (t * s1) * s2                                # (1, 1)
    out_ref[0, 0] = result[0, 0]


@jax.jit
def fixed_hidden_mlp(x, w, b, rand_weight):
    """x: (2, 20) f32; w: (20, 20) nn.Linear weight (out, in); b: (20,); rand_weight: (20, 20)."""
    x = x.astype(jnp.float32)
    wt = jnp.transpose(w.astype(jnp.float32))             # (in, out): kernel never transposes
    b_row = b.reshape(1, OUT_FEATURES).astype(jnp.float32)
    rw = rand_weight.astype(jnp.float32)

    # Pack everything into one slab -> a single HBM->VMEM DMA for the kernel.
    # Every segment starts on an 8-sublane boundary.
    slab = jnp.concatenate([
        jnp.pad(x, ((0, 8 - BATCH), (0, 0))),              # rows  0..7
        jnp.pad(wt, ((0, 4), (0, 0))),                     # rows  8..31
        jnp.pad(b_row, ((0, 7), (0, 0))),                  # rows 32..39
        jnp.pad(rw, ((0, 4), (0, 0))),                     # rows 40..63
    ], axis=0)                                             # (64, 20) f32, ~5 KB

    out = pl.pallas_call(
        fixed_hidden_mlp_kernel,
        out_shape=jax.ShapeDtypeStruct((1, 1), jnp.float32),
        in_specs=[pl.BlockSpec(memory_space=pltpu.MemorySpace.VMEM)],
        out_specs=pl.BlockSpec(memory_space=pltpu.MemorySpace.SMEM),
    )(slab)
    return out[0, 0]  # scalar, matching torch's X.sum()


def reference(x, w, b, rand_weight):
    h = x @ w.T + b
    h = jnp.maximum(h @ rand_weight + 1.0, 0.0)
    h = h @ w.T + b

    def cond(c):
        return jnp.sum(jnp.abs(c)) > 1.0

    def body(c):
        return c / 2.0

    h = lax.while_loop(cond, body, h)
    return jnp.sum(h)


if __name__ == "__main__":
    key = jax.random.PRNGKey(0)
    kx, kw, kb, kr = jax.random.split(key, 4)

    # Deterministic synthetic parameters (shapes match nn.Linear(20, 20) and
    # the fixed torch.rand((20, 20)) buffer).
    x = jax.random.uniform(kx, (BATCH, IN_FEATURES), dtype=jnp.float32)
    bound = 1.0 / jnp.sqrt(IN_FEATURES)
    w = jax.random.uniform(kw, (OUT_FEATURES, IN_FEATURES), dtype=jnp.float32,
                           minval=-bound, maxval=bound)
    b = jax.random.uniform(kb, (OUT_FEATURES,), dtype=jnp.float32,
                           minval=-bound, maxval=bound)
    rand_weight = jax.random.uniform(kr, (IN_FEATURES, OUT_FEATURES), dtype=jnp.float32)

    out = fixed_hidden_mlp(x, w, b, rand_weight)
    out = jax.block_until_ready(out)

    ref = reference(x, w, b, rand_weight)
    assert jnp.allclose(out, ref, rtol=1e-5, atol=1e-5), (out, ref)

    print("KERNEL_OK")
</pallas_src>

<mosaic_0001>
module attributes {stable_mosaic.version = 11 : i64} {
  func.func @fixed_hidden_mlp_kernel(%arg0: memref<64x20xf32, #tpu.memory_space<vmem>>, %arg1: memref<1x1xf32, #tpu.memory_space<smem>>) attributes {dimension_semantics = [], scalar_prefetch = 0 : i64, scratch_operands = 0 : i64, tpu.core_type = #tpu.core_type<tc>} {
    %c0 = arith.constant 0 : index
    %c0_0 = arith.constant 0 : index
    %0 = vector.load %arg0[%c0, %c0_0] : memref<64x20xf32, #tpu.memory_space<vmem>>, vector<2x20xf32>
    %c8 = arith.constant 8 : index
    %c0_1 = arith.constant 0 : index
    %1 = vector.load %arg0[%c8, %c0_1] : memref<64x20xf32, #tpu.memory_space<vmem>>, vector<20x20xf32>
    %c32 = arith.constant 32 : index
    %c0_2 = arith.constant 0 : index
    %2 = vector.load %arg0[%c32, %c0_2] : memref<64x20xf32, #tpu.memory_space<vmem>>, vector<1x20xf32>
    %c40 = arith.constant 40 : index
    %c0_3 = arith.constant 0 : index
    %3 = vector.load %arg0[%c40, %c0_3] : memref<64x20xf32, #tpu.memory_space<vmem>>, vector<20x20xf32>
    %cst = arith.constant dense<0.000000e+00> : vector<2x20xf32>
    %4 = tpu.matmul %0, %1, %cst {dimension_numbers = #tpu.dot_dimension_numbers<[1], [0], [0], [1], [0, 0, 1, 1], [], []>} : vector<2x20xf32>, vector<20x20xf32>, vector<2x20xf32> -> vector<2x20xf32>
    %5 = vector.broadcast %2 : vector<1x20xf32> to vector<2x20xf32>
    %6 = arith.addf %4, %5 : vector<2x20xf32>
    %cst_4 = arith.constant dense<0.000000e+00> : vector<2x20xf32>
    %7 = tpu.matmul %6, %3, %cst_4 {dimension_numbers = #tpu.dot_dimension_numbers<[1], [0], [0], [1], [0, 0, 1, 1], [], []>} : vector<2x20xf32>, vector<20x20xf32>, vector<2x20xf32> -> vector<2x20xf32>
    %cst_5 = arith.constant 1.000000e+00 : f32
    %8 = vector.broadcast %cst_5 : f32 to vector<2x20xf32>
    %9 = arith.addf %7, %8 : vector<2x20xf32>
    %cst_6 = arith.constant 0.000000e+00 : f32
    %10 = vector.broadcast %cst_6 : f32 to vector<2x20xf32>
    %11 = arith.maximumf %9, %10 : vector<2x20xf32>
    %cst_7 = arith.constant dense<0.000000e+00> : vector<2x20xf32>
    %12 = tpu.matmul %11, %1, %cst_7 {dimension_numbers = #tpu.dot_dimension_numbers<[1], [0], [0], [1], [0, 0, 1, 1], [], []>} : vector<2x20xf32>, vector<20x20xf32>, vector<2x20xf32> -> vector<2x20xf32>
    %13 = vector.broadcast %2 : vector<1x20xf32> to vector<2x20xf32>
    %14 = arith.addf %12, %13 : vector<2x20xf32>
    %15 = vector.shape_cast %14 : vector<2x20xf32> to vector<1x2x20xf32>
    %cst_8 = arith.constant dense<0.000000e+00> : vector<1xf32>
    %16 = vector.multi_reduction <add>, %15, %cst_8 [1, 2] : vector<1x2x20xf32> to vector<1xf32>
    %17 = vector.shape_cast %16 : vector<1xf32> to vector<1x1x1xf32>
    %18 = vector.extract %17[0, 0, 0] : f32 from vector<1x1x1xf32>
    %19 = vector.broadcast %18 : f32 to vector<1x1xf32>
    %20 = math.absf %14 : vector<2x20xf32>
    %21 = vector.shape_cast %20 : vector<2x20xf32> to vector<1x2x20xf32>
    %cst_9 = arith.constant dense<0.000000e+00> : vector<1xf32>
    %22 = vector.multi_reduction <add>, %21, %cst_9 [1, 2] : vector<1x2x20xf32> to vector<1xf32>
    %23 = vector.shape_cast %22 : vector<1xf32> to vector<1x1x1xf32>
    %24 = vector.extract %23[0, 0, 0] : f32 from vector<1x1x1xf32>
    %25 = vector.broadcast %24 : f32 to vector<1x1xf32>
    %26 = tpu.bitcast %25 : vector<1x1xf32> -> vector<1x1xi32>
    %c23_i32 = arith.constant 23 : i32
    %27 = vector.broadcast %c23_i32 : i32 to vector<1x1xi32>
    %28 = arith.shrsi %26, %27 : vector<1x1xi32>
    %c255_i32 = arith.constant 255 : i32
    %29 = vector.broadcast %c255_i32 : i32 to vector<1x1xi32>
    %30 = arith.andi %28, %29 : vector<1x1xi32>
    %c8388607_i32 = arith.constant 8388607 : i32
    %31 = vector.broadcast %c8388607_i32 : i32 to vector<1x1xi32>
    %32 = arith.andi %26, %31 : vector<1x1xi32>
    %cst_10 = arith.constant 1.000000e+00 : f32
    %33 = vector.broadcast %cst_10 : f32 to vector<1x1xf32>
    %34 = arith.cmpf ogt, %25, %33 : vector<1x1xf32>
    %c127_i32 = arith.constant 127 : i32
    %35 = vector.broadcast %c127_i32 : i32 to vector<1x1xi32>
    %36 = arith.subi %30, %35 : vector<1x1xi32>
    %c0_i32 = arith.constant 0 : i32
    %37 = vector.broadcast %c0_i32 : i32 to vector<1x1xi32>
    %38 = arith.cmpi ne, %32, %37 : vector<1x1xi32>
    %39 = arith.extui %38 : vector<1x1xi1> to vector<1x1xi32>
    %40 = arith.addi %36, %39 : vector<1x1xi32>
    %c0_i32_11 = arith.constant 0 : i32
    %41 = vector.broadcast %c0_i32_11 : i32 to vector<1x1xi32>
    %42 = arith.select %34, %40, %41 : vector<1x1xi1>, vector<1x1xi32>
    %c64_i32 = arith.constant 64 : i32
    %43 = vector.broadcast %c64_i32 : i32 to vector<1x1xi32>
    %44 = arith.minsi %42, %43 : vector<1x1xi32>
    %45 = arith.subi %42, %44 : vector<1x1xi32>
    %c127_i32_12 = arith.constant 127 : i32
    %46 = vector.broadcast %c127_i32_12 : i32 to vector<1x1xi32>
    %47 = arith.subi %46, %44 : vector<1x1xi32>
    %c23_i32_13 = arith.constant 23 : i32
    %48 = vector.broadcast %c23_i32_13 : i32 to vector<1x1xi32>
    %49 = arith.shli %47, %48 : vector<1x1xi32>
    %50 = tpu.bitcast %49 : vector<1x1xi32> -> vector<1x1xf32>
    %c127_i32_14 = arith.constant 127 : i32
    %51 = vector.broadcast %c127_i32_14 : i32 to vector<1x1xi32>
    %52 = arith.subi %51, %45 : vector<1x1xi32>
    %c23_i32_15 = arith.constant 23 : i32
    %53 = vector.broadcast %c23_i32_15 : i32 to vector<1x1xi32>
    %54 = arith.shli %52, %53 : vector<1x1xi32>
    %55 = tpu.bitcast %54 : vector<1x1xi32> -> vector<1x1xf32>
    %56 = arith.mulf %19, %50 : vector<1x1xf32>
    %57 = arith.mulf %56, %55 : vector<1x1xf32>
    %58 = vector.extract %57[0, 0] : f32 from vector<1x1xf32>
    %c0_16 = arith.constant 0 : index
    %c0_17 = arith.constant 0 : index
    %59 = memref.load %arg1[%c0_16, %c0_17] : memref<1x1xf32, #tpu.memory_space<smem>>
    memref.store %58, %arg1[%c0_16, %c0_17] : memref<1x1xf32, #tpu.memory_space<smem>>
    return
  }
}

</mosaic_0001>

<bundles_post_ra>
// kernel: fixed_hidden_mlp.1
= control target key start
LH: loop header
LB: loop body
LE: loop exit
PB: predicated region body
PF: predicated region fallthrough
CT: control target
= control target key end

     0   :  { %vm25_vm0 = vcmask 1043456   ;;  %v377_v1 = vmov 0.0   ;;  %vm378_vm1 = vmmov 0   ;;  %s427_s0 = inlined_call_operand.vmem [shape: f32[64,20], index: 0, kind: input, shape index: {}]   ;;  %s428_s1 = inlined_call_operand.hbm [shape: f32[1,1], index: 1, kind: output, shape index: {}]  }
   0x1   :  { %v12_v0 = vld [vmem:[%s427_s0 + $0x18] sm:$0xf]  ;;  %330 = vmatprep.subr.mxu0 %v377_v1  ;;  %v11_v2 = vld [vmem:[%s427_s0 + $0x10] sm:$0xff]  ;;  %339 = vmatprep.subr.mxu1 %v377_v1 }
   0x2   :  { %v16_v3 = vld [vmem:[%s427_s0 + $0x38] sm:$0xf]  ;;  %331 = vmatpush3.msk.msra.mxu0 %vm25_vm0, %v12_v0  ;;  %336 = vmatprep.mubr.msk.f32.mxu0 %vm378_vm1, %v377_v1 }
   0x3   :  { %6 = vsyncpa [#allocation3], 0  ;;  %332 = vmatprep.subr.mxu0 %v377_v1  ;;  %v10_v4 = vld [vmem:[%s427_s0 + $0x8] sm:$0xff]  ;;  %340 = vmatpush3.msk.msra.mxu1 %vm25_vm0, %v16_v3  ;;  %v9_v5 = vld [vmem:[%s427_s0] sm:$0x3]  ;;  %vm21_vm2 = vcmask 162816  }
   0x4   :  { %333 = vmatpush3.msra.mxu0 %v11_v2  ;;  %341 = vmatprep.subr.mxu1 %v377_v1  ;;  %v15_v6 = vld [vmem:[%s427_s0 + $0x30] sm:$0xff]  ;;  %v14_v7 = vld [vmem:[%s427_s0 + $0x28] sm:$0xff]  ;;  %v310_v8 = vld [vmem:[%s427_s0 + $0x20] ss:$0 sm:$0xff]  ;;  %vm249_vm3 = vcmask 156672   ;;  %v379_v41 = vmov 0  }
   0x5   :  { %334 = vmatprep.subr.mxu0 %v377_v1  ;;  %345 = vmatprep.mubr.msk.f32.mxu1 %vm378_vm1, %v377_v1  ;;  %s380_s24 = smov [#allocation2]  }
   0x6   :  { %335 = vmatpush3.msra.mxu0 %v10_v4  ;;  %342 = vmatpush3.msra.mxu1 %v15_v6 }
   0x7   :  { %337 = vmatmul.mubr.msk.f32.vlgmr.msra.gmra.mxu0 %vm21_vm2, %v9_v5  ;;  %348 = vmatprep.subr.mxu0 %v377_v1 }
   0x8   :  { %349 = vmatpush3.msk.msra.mxu0 %vm25_vm0, %v12_v0  ;;  %354 = vmatprep.mubr.msk.f32.mxu0 %vm378_vm1, %v377_v1 }
   0x9   :  { %350 = vmatprep.subr.mxu0 %v377_v1  ;;  %343 = vmatprep.subr.mxu1 %v377_v1 }
   0xa   :  { %351 = vmatpush3.msra.mxu0 %v11_v2  ;;  %344 = vmatpush3.msra.mxu1 %v14_v7 }
   0xb   :  { %352 = vmatprep.subr.mxu0 %v377_v1 }
   0xc   :  { %353 = vmatpush3.msra.mxu0 %v10_v4 }
  0xc7   :  { %v95_v9 = vpop.f32.mrf.mxu0 }
  0xc8   :  { %v96_v10 = vadd.f32 %v310_v8, %v95_v9 }
  0xc9   :  { %v338_v11 = vpop.f32.mrf.mxu0 }
  0xca   :  { %346 = vmatmul.mubr.msk.f32.vlgmr.msra.gmra.mxu1 %vm21_vm2, %v96_v10 }
 0x18a   :  { %v171_v12 = vpop.f32.mrf.mxu1 }
 0x18b   :  { %v172_v13 = vadd.f32 1.0, %v171_v12 }
 0x18c   :  { %v347_v14 = vpop.f32.mrf.mxu1 }
 0x18d   :  { %v175_v15 = vmax.f32 %v172_v13, 0.0 }
 0x18f   :  { %355 = vmatmul.mubr.msk.f32.vlgmr.msra.gmra.mxu0 %vm21_vm2, %v175_v15 }
 0x24f   :  { %v245_v16 = vpop.f32.mrf.mxu0 }
 0x250   :  { %v246_v17 = vadd.f32 %v310_v8, %v245_v16 }
 0x251   :  { %v356_v18 = vpop.f32.mrf.mxu0 }
 0x252   :  { %v250_v19 = vsel %vm249_vm3, %v246_v17, 0.0  ;;  %v261_v20 = vand.u32 2147483647, %v246_v17 }
 0x253   :  { %251 = vadd.xlane.f32.xlu0 %v250_v19 }
 0x254   :  { %v262_v21 = vsel %vm249_vm3, %v261_v20, 0.0 }
 0x257   :  { %263 = vadd.xlane.f32.xlu0 %v262_v21 }
 0x2dc   :  { %v252_v22 = vpop.xlane.xlu0 %251 }
 0x2dd   :  { %v253_v23 = vrot.slane %v252_v22, 4 }
 0x2df   :  { %v254_v24 = vadd.f32 %v253_v23, %v252_v22 }
 0x2e0   :  { %v264_v25 = vpop.xlane.xlu0 %263 }
 0x2e1   :  { %v255_v26 = vrot.slane %v254_v24, 2  ;;  %v265_v27 = vrot.slane %v264_v25, 4 }
 0x2e3   :  { %v266_v28 = vadd.f32 %v265_v27, %v264_v25  ;;  %v256_v29 = vadd.f32 %v255_v26, %v254_v24 }
 0x2e5   :  { %v267_v30 = vrot.slane %v266_v28, 2  ;;  %v257_v31 = vrot.slane %v256_v29, 1 }
 0x2e7   :  { %v268_v32 = vadd.f32 %v267_v30, %v266_v28  ;;  %v258_v33 = vadd.f32 %v257_v31, %v256_v29 }
 0x2e9   :  { %357 = vpush %v258_v33  ;;  %v269_v34 = vrot.slane %v268_v32, 1 }
 0x2eb   :  { %v270_v35 = vadd.f32 %v269_v34, %v268_v32 }
 0x2ed   :  { %359 = vpush %v270_v35 }
 0x31a   :  { %s358_s0 = spop %357 }
 0x31b   :  { %v260_v50 = vstv %s358_s0 }
 0x31e   :  { %s360_s22 = spop %359 }
 0x31f   :  { %v272_v36 = vstv %s360_s22 }
 0x320   :  { %v274_v37 = vshra.s32 %v272_v36, 23  ;;  %v276_v38 = vand.u32 8388607, %v272_v36  ;;  %vm277_vm5 = vcmp.gt.f32.partialorder %v272_v36, 1.0 }
 0x322   :  { %v275_v39 = vand.u32 255, %v274_v37  ;;  %vm279_vm4 = vcmp.ne.s32.totalorder %v276_v38, 0 }
 0x323   :  { %v280_v42 = vsel %vm279_vm4, 1, %v379_v41 }
 0x324   :  { %v317_v40 = vadd.s32 4294967169, %v275_v39 }
 0x326   :  { %v281_v43 = vadd.s32 %v317_v40, %v280_v42 }
 0x328   :  { %v282_v44 = vsel %vm277_vm5, %v281_v43, 0 }
 0x329   :  { %vm283_vm6 = vcmp.lt.s32.totalorder %v282_v44, 64 }
 0x32a   :  { %v284_v45 = vsel %vm283_vm6, %v282_v44, 64 }
 0x32b   :  { %v285_v46 = vsub.s32 %v282_v44, %v284_v45  ;;  %v286_v47 = vsub.s32 127, %v284_v45 }
 0x32d   :  { %v287_v48 = vshll.u32 %v286_v47, 23  ;;  %v289_v49 = vsub.s32 127, %v285_v46 }
 0x32f   :  { %v290_v51 = vshll.u32 %v289_v49, 23  ;;  %v292_v52 = vmul.f32 %v287_v48, %v260_v50 }
 0x331   :  { %v293_v53 = vmul.f32 %v292_v52, %v290_v51 }
 0x333   :  { %361 = vpush %v293_v53 }
 0x364   :  { %s362_s23 = spop %361 }
 0x365   :  { %296 = sst [smem:[#allocation2]] %s362_s23 }
 0x366   :  { %304 = dma.smem_to_hbm %s380_s24, 16, %s428_s1, [#allocation3]  }
 0x367   :  { %375 = dma.done.wait [#allocation3], 16  }
 0x368   :  { %376 = vsyncadd [#allocation3], 4294967280 }
 0x369   :  { %308 = sfence }
 0x36a   :  { %309 = vsyncpa [#allocation3], 1 }

</bundles_post_ra>
